<compile_context>
chip_gen: v6e
topology: v6e:2x2x1
jax: 0.10.0
libtpu: 0.0.40
codegen_flags: <defaults>
</compile_context>

<pallas_src>
import functools
import math

import jax
import jax.numpy as jnp
from jax.experimental import pallas as pl
from jax.experimental.pallas import tpu as pltpu


_VMEM_SOFT_CAP = 36 << 20    # keep weights + tiles well inside v7x's 64 MiB VMEM
_VMEM_LIMIT_CAP = 48 << 20


def _round_up(v, m):
    return ((v + m - 1) // m) * m


def _cast(v, dtype):
    return v if v.dtype == dtype else v.astype(dtype)


# ----------------------------------------------------------------------------
# Kernel
# ----------------------------------------------------------------------------
def _make_mlp_cond_kernel(n_hidden, mxu_dtype):
    """Kernel refs: x, W0, b0, (Wh, bh)*n_hidden, Wgb, bgb, out."""

    def kernel(*refs):
        x_ref = refs[0]
        params = refs[1:-1]
        out_ref = refs[-1]

        h = _cast(x_ref[...], mxu_dtype)

        # First linear — NO activation afterwards (matches the PyTorch module).
        w0, b0 = params[0], params[1]
        h = jnp.dot(h, w0[...], preferred_element_type=jnp.float32) + b0[...]

        # Hidden linears, each followed by ReLU.  Only MXU operands are cast to
        # mxu_dtype; bias add / ReLU stay in f32.
        for i in range(n_hidden):
            w = params[2 + 2 * i]
            b = params[3 + 2 * i]
            h = jnp.dot(_cast(h, mxu_dtype), w[...],
                        preferred_element_type=jnp.float32) + b[...]
            h = jnp.maximum(h, 0.0)

        # Fused gamma|beta head (zero-padded to a 128-lane-aligned width): one
        # matmul + one unmasked lane-dense store per grid step.
        wgb, bgb = params[-2], params[-1]
        out = jnp.dot(_cast(h, mxu_dtype), wgb[...],
                      preferred_element_type=jnp.float32) + bgb[...]
        out_ref[...] = out.astype(out_ref.dtype)

    return kernel


# ----------------------------------------------------------------------------
# Wrapper-side parameter prep / tiling heuristics
# ----------------------------------------------------------------------------
def _prepare_params(params, n_hidden, mxu_dtype):
    """Fuse gamma/beta weights, pad the head to 128 lanes, cast MXU operands."""
    n_output = params[-1].shape[-1]
    wg, bg, wb, bb = params[-4], params[-3], params[-2], params[-1]
    n_fused = 2 * n_output
    n_out_pad = _round_up(n_fused, 128)

    wgb = jnp.concatenate([wg, wb], axis=1)
    bgb = jnp.concatenate([bg, bb], axis=1)
    if n_out_pad != n_fused:
        wgb = jnp.pad(wgb, ((0, 0), (0, n_out_pad - n_fused)))
        bgb = jnp.pad(bgb, ((0, 0), (0, n_out_pad - n_fused)))

    prepped = [_cast(params[0], mxu_dtype), _cast(params[1], jnp.float32)]
    for i in range(n_hidden):
        prepped.append(_cast(params[2 + 2 * i], mxu_dtype))
        prepped.append(_cast(params[3 + 2 * i], jnp.float32))
    prepped += [_cast(wgb, mxu_dtype), _cast(bgb, jnp.float32)]
    return prepped, n_output, n_out_pad


def _param_bytes(prepped):
    return sum(math.prod(p.shape) * p.dtype.itemsize for p in prepped)


def _tile_bytes(block_rows, n_input, n_out_pad, x_itemsize):
    # double-buffered x tile + double-buffered f32 output tile
    return 2 * block_rows * n_input * x_itemsize + 2 * block_rows * n_out_pad * 4


def _act_bytes(block_rows, max_width):
    # peak in-kernel activation footprint: f32 h + bf16 MXU copy (+ headroom)
    return 2 * block_rows * max_width * 12


def _footprint(block_rows, n_input, n_out_pad, x_itemsize, param_bytes, max_width):
    return (param_bytes * 2
            + _tile_bytes(block_rows, n_input, n_out_pad, x_itemsize)
            + _act_bytes(block_rows, max_width))


def _choose_block_rows(batch, n_input, n_out_pad, x_itemsize, param_bytes, max_width):
    # One big tile (up to 512 rows, the measured roofline sweet spot); batches
    # larger than that split naturally into multiple grid steps (shards across
    # both v7x TensorCores via the "parallel" grid axis).
    block_rows = min(_round_up(max(batch, 8), 8), 512)
    while block_rows > 8 and _footprint(block_rows, n_input, n_out_pad,
                                        x_itemsize, param_bytes,
                                        max_width) > _VMEM_SOFT_CAP:
        block_rows = max(8, (block_rows // 2) // 8 * 8)
    return block_rows


def mlp_conditioning_forward(x, params, *, n_hidden, mxu_dtype=jnp.bfloat16):
    """params: flat list [W0,b0, (Wh,bh)*n_hidden, Wg,bg, Wb,bb]; W as [in,out], b as [1,out]."""
    B, n_input = x.shape
    dim_hidden = params[0].shape[1]
    prepped, n_output, n_out_pad = _prepare_params(params, n_hidden, mxu_dtype)

    x_in = _cast(x, mxu_dtype)                       # halves x DMA bytes when bf16
    p_bytes = _param_bytes(prepped)
    max_width = max(n_input, dim_hidden, n_out_pad)
    block_rows = _choose_block_rows(B, n_input, n_out_pad,
                                    x_in.dtype.itemsize, p_bytes, max_width)
    B_pad = _round_up(B, block_rows)
    if B_pad != B:
        x_in = jnp.pad(x_in, ((0, B_pad - B), (0, 0)))

    grid = (B_pad // block_rows,)
    vmem_limit = int(min(max(_footprint(block_rows, n_input, n_out_pad,
                                        x_in.dtype.itemsize, p_bytes, max_width)
                             + (2 << 20), 16 << 20),
                         _VMEM_LIMIT_CAP))

    # Advisory cost estimate for the XLA scheduler.
    flops = 2 * B_pad * (n_input * dim_hidden
                         + n_hidden * dim_hidden * dim_hidden
                         + dim_hidden * n_out_pad)
    bytes_accessed = (B_pad * n_input * x_in.dtype.itemsize
                      + p_bytes + B_pad * n_out_pad * 4)
    cost = pl.CostEstimate(flops=flops, transcendentals=0,
                           bytes_accessed=bytes_accessed)

    kernel = _make_mlp_cond_kernel(n_hidden, mxu_dtype)
    x_spec = pl.BlockSpec((block_rows, n_input), lambda i: (i, 0))
    out_spec = pl.BlockSpec((block_rows, n_out_pad), lambda i: (i, 0))

    def full_spec(p, pipeline_mode):
        # Every parameter is a full-array block, resident across the whole grid.
        if pipeline_mode is None:
            return pl.BlockSpec(p.shape, lambda i: (0, 0))
        return pl.BlockSpec(p.shape, lambda i: (0, 0), pipeline_mode=pipeline_mode)

    def build(single_buffer_params):
        mode = pl.Buffered(1) if single_buffer_params else None
        return pl.pallas_call(
            kernel,
            out_shape=jax.ShapeDtypeStruct((B_pad, n_out_pad), jnp.float32),
            grid_spec=pltpu.PrefetchScalarGridSpec(
                num_scalar_prefetch=0,
                grid=grid,
                in_specs=[x_spec] + [full_spec(p, mode) for p in prepped],
                out_specs=out_spec,
            ),
            compiler_params=pltpu.CompilerParams(
                dimension_semantics=("parallel",),
                vmem_limit_bytes=vmem_limit,
            ),
            cost_estimate=cost,
        )

    try:
        out = build(True)(x_in, *prepped)
        out = jax.block_until_ready(out)
    except Exception:
        # Fallback for JAX builds that reject single-buffering (Buffered(1)).
        out = build(False)(x_in, *prepped)

    gamma = out[:B, :n_output]
    beta = out[:B, n_output:2 * n_output]
    return gamma, beta


# ----------------------------------------------------------------------------
# Deterministic parameter construction (matches the PyTorch module's shapes:
# Linear(n_input, dim_hidden), n_hidden x Linear(dim_hidden, dim_hidden),
# gamma/beta: Linear(dim_hidden, n_output)).
# Weights: kaiming_uniform_(nonlinearity='relu') -> U(-sqrt(6/fan_in), +sqrt(6/fan_in))
# Biases : PyTorch default Linear bias init      -> U(-1/sqrt(fan_in), +1/sqrt(fan_in))
# ----------------------------------------------------------------------------
def init_params(key, n_input, n_output, dim_hidden, n_hidden):
    dims = [(n_input, dim_hidden)]
    dims += [(dim_hidden, dim_hidden)] * n_hidden
    dims += [(dim_hidden, n_output), (dim_hidden, n_output)]  # gamma, beta

    params = []
    for (fan_in, fan_out) in dims:
        key, kw, kb = jax.random.split(key, 3)
        w_bound = math.sqrt(6.0 / fan_in)
        b_bound = 1.0 / math.sqrt(fan_in)
        w = jax.random.uniform(kw, (fan_in, fan_out), jnp.float32, -w_bound, w_bound)
        b = jax.random.uniform(kb, (1, fan_out), jnp.float32, -b_bound, b_bound)
        params += [w, b]
    return params


def reference_forward(x, params, n_hidden, mxu_dtype=jnp.float32):
    def mm(a, w):
        return jnp.dot(a.astype(mxu_dtype), w.astype(mxu_dtype),
                       preferred_element_type=jnp.float32)

    h = mm(x, params[0]) + params[1]
    for i in range(n_hidden):
        h = jnp.maximum(mm(h, params[2 + 2 * i]) + params[3 + 2 * i], 0.0)
    gamma = mm(h, params[-4]) + params[-3]
    beta = mm(h, params[-2]) + params[-1]
    return gamma, beta


if __name__ == "__main__":
    n_input, n_output = 32, 16
    dim_hidden, n_hidden = 64, 2
    batch = 16

    key = jax.random.PRNGKey(0)
    kx, kp = jax.random.split(key)
    x = jax.random.normal(kx, (batch, n_input), jnp.float32)
    params = init_params(kp, n_input, n_output, dim_hidden, n_hidden)

    g_ref, b_ref = reference_forward(x, params, n_hidden)

    # f32 MXU path — exact semantics check against the f32 reference.
    g32, b32 = mlp_conditioning_forward(x, params, n_hidden=n_hidden,
                                        mxu_dtype=jnp.float32)
    jax.block_until_ready((g32, b32))
    assert g32.shape == (batch, n_output) and b32.shape == (batch, n_output)
    assert jnp.allclose(g32, g_ref, atol=1e-5, rtol=1e-5)
    assert jnp.allclose(b32, b_ref, atol=1e-5, rtol=1e-5)

    # Default bf16-MXU path (v6e/v7x throughput): tight vs bf16-cast reference,
    # loose vs the f32 reference.
    gbf, bbf = mlp_conditioning_forward(x, params, n_hidden=n_hidden)
    jax.block_until_ready((gbf, bbf))
    g_bref, b_bref = reference_forward(x, params, n_hidden, jnp.bfloat16)
    assert gbf.shape == (batch, n_output) and bbf.shape == (batch, n_output)
    assert jnp.allclose(gbf, g_bref, atol=1e-3, rtol=1e-3)
    assert jnp.allclose(bbf, b_bref, atol=1e-3, rtol=1e-3)
    assert jnp.allclose(gbf, g_ref, atol=1e-1, rtol=5e-2)
    assert jnp.allclose(bbf, b_ref, atol=1e-1, rtol=5e-2)

    print("KERNEL_OK")
</pallas_src>

<mosaic_0001>
module attributes {stable_mosaic.version = 11 : i64} {
  func.func @kernel(%arg0: i32, %arg1: memref<16x32xf32, #tpu.memory_space<vmem>>, %arg2: memref<32x64xf32, #tpu.memory_space<vmem>>, %arg3: memref<1x64xf32, #tpu.memory_space<vmem>>, %arg4: memref<64x64xf32, #tpu.memory_space<vmem>>, %arg5: memref<1x64xf32, #tpu.memory_space<vmem>>, %arg6: memref<64x64xf32, #tpu.memory_space<vmem>>, %arg7: memref<1x64xf32, #tpu.memory_space<vmem>>, %arg8: memref<64x128xf32, #tpu.memory_space<vmem>>, %arg9: memref<1x128xf32, #tpu.memory_space<vmem>>, %arg10: memref<16x128xf32, #tpu.memory_space<vmem>>) attributes {dimension_semantics = [#tpu.dimension_semantics<parallel>], iteration_bounds = array<i64: 1>, scalar_prefetch = 0 : i64, scratch_operands = 0 : i64, tpu.core_type = #tpu.core_type<tc>, window_params = [{transform_indices = @transform_0, window_bounds = array<i64: 16, 32>}, {pipeline_mode = #tpu.pipeline_mode<synchronous>, transform_indices = @transform_1, window_bounds = array<i64: 32, 64>}, {pipeline_mode = #tpu.pipeline_mode<synchronous>, transform_indices = @transform_2, window_bounds = array<i64: 1, 64>}, {pipeline_mode = #tpu.pipeline_mode<synchronous>, transform_indices = @transform_3, window_bounds = array<i64: 64, 64>}, {pipeline_mode = #tpu.pipeline_mode<synchronous>, transform_indices = @transform_4, window_bounds = array<i64: 1, 64>}, {pipeline_mode = #tpu.pipeline_mode<synchronous>, transform_indices = @transform_5, window_bounds = array<i64: 64, 64>}, {pipeline_mode = #tpu.pipeline_mode<synchronous>, transform_indices = @transform_6, window_bounds = array<i64: 1, 64>}, {pipeline_mode = #tpu.pipeline_mode<synchronous>, transform_indices = @transform_7, window_bounds = array<i64: 64, 128>}, {pipeline_mode = #tpu.pipeline_mode<synchronous>, transform_indices = @transform_8, window_bounds = array<i64: 1, 128>}, {transform_indices = @transform_9, window_bounds = array<i64: 16, 128>}]} {
    %c0 = arith.constant 0 : index
    %c0_0 = arith.constant 0 : index
    %0 = vector.load %arg1[%c0, %c0_0] : memref<16x32xf32, #tpu.memory_space<vmem>>, vector<16x32xf32>
    %c0_1 = arith.constant 0 : index
    %c0_2 = arith.constant 0 : index
    %1 = vector.load %arg2[%c0_1, %c0_2] : memref<32x64xf32, #tpu.memory_space<vmem>>, vector<32x64xf32>
    %cst = arith.constant dense<0.000000e+00> : vector<16x64xf32>
    %2 = tpu.matmul %0, %1, %cst {dimension_numbers = #tpu.dot_dimension_numbers<[1], [0], [0], [1], [0, 0, 1, 1], [], []>} : vector<16x32xf32>, vector<32x64xf32>, vector<16x64xf32> -> vector<16x64xf32>
    %c0_3 = arith.constant 0 : index
    %c0_4 = arith.constant 0 : index
    %3 = vector.load %arg3[%c0_3, %c0_4] : memref<1x64xf32, #tpu.memory_space<vmem>>, vector<1x64xf32>
    %4 = vector.broadcast %3 : vector<1x64xf32> to vector<16x64xf32>
    %5 = arith.addf %2, %4 : vector<16x64xf32>
    %c0_5 = arith.constant 0 : index
    %c0_6 = arith.constant 0 : index
    %6 = vector.load %arg4[%c0_5, %c0_6] : memref<64x64xf32, #tpu.memory_space<vmem>>, vector<64x64xf32>
    %cst_7 = arith.constant dense<0.000000e+00> : vector<16x64xf32>
    %7 = tpu.matmul %5, %6, %cst_7 {dimension_numbers = #tpu.dot_dimension_numbers<[1], [0], [0], [1], [0, 0, 1, 1], [], []>} : vector<16x64xf32>, vector<64x64xf32>, vector<16x64xf32> -> vector<16x64xf32>
    %c0_8 = arith.constant 0 : index
    %c0_9 = arith.constant 0 : index
    %8 = vector.load %arg5[%c0_8, %c0_9] : memref<1x64xf32, #tpu.memory_space<vmem>>, vector<1x64xf32>
    %9 = vector.broadcast %8 : vector<1x64xf32> to vector<16x64xf32>
    %10 = arith.addf %7, %9 : vector<16x64xf32>
    %cst_10 = arith.constant 0.000000e+00 : f32
    %11 = vector.broadcast %cst_10 : f32 to vector<16x64xf32>
    %12 = arith.maximumf %10, %11 : vector<16x64xf32>
    %c0_11 = arith.constant 0 : index
    %c0_12 = arith.constant 0 : index
    %13 = vector.load %arg6[%c0_11, %c0_12] : memref<64x64xf32, #tpu.memory_space<vmem>>, vector<64x64xf32>
    %cst_13 = arith.constant dense<0.000000e+00> : vector<16x64xf32>
    %14 = tpu.matmul %12, %13, %cst_13 {dimension_numbers = #tpu.dot_dimension_numbers<[1], [0], [0], [1], [0, 0, 1, 1], [], []>} : vector<16x64xf32>, vector<64x64xf32>, vector<16x64xf32> -> vector<16x64xf32>
    %c0_14 = arith.constant 0 : index
    %c0_15 = arith.constant 0 : index
    %15 = vector.load %arg7[%c0_14, %c0_15] : memref<1x64xf32, #tpu.memory_space<vmem>>, vector<1x64xf32>
    %16 = vector.broadcast %15 : vector<1x64xf32> to vector<16x64xf32>
    %17 = arith.addf %14, %16 : vector<16x64xf32>
    %cst_16 = arith.constant 0.000000e+00 : f32
    %18 = vector.broadcast %cst_16 : f32 to vector<16x64xf32>
    %19 = arith.maximumf %17, %18 : vector<16x64xf32>
    %c0_17 = arith.constant 0 : index
    %c0_18 = arith.constant 0 : index
    %20 = vector.load %arg8[%c0_17, %c0_18] : memref<64x128xf32, #tpu.memory_space<vmem>>, vector<64x128xf32>
    %cst_19 = arith.constant dense<0.000000e+00> : vector<16x128xf32>
    %21 = tpu.matmul %19, %20, %cst_19 {dimension_numbers = #tpu.dot_dimension_numbers<[1], [0], [0], [1], [0, 0, 1, 1], [], []>} : vector<16x64xf32>, vector<64x128xf32>, vector<16x128xf32> -> vector<16x128xf32>
    %c0_20 = arith.constant 0 : index
    %c0_21 = arith.constant 0 : index
    %22 = vector.load %arg9[%c0_20, %c0_21] : memref<1x128xf32, #tpu.memory_space<vmem>>, vector<1x128xf32>
    %23 = vector.broadcast %22 : vector<1x128xf32> to vector<16x128xf32>
    %24 = arith.addf %21, %23 : vector<16x128xf32>
    %c0_22 = arith.constant 0 : index
    %c0_23 = arith.constant 0 : index
    %25 = vector.load %arg10[%c0_22, %c0_23] : memref<16x128xf32, #tpu.memory_space<vmem>>, vector<16x128xf32>
    tpu.vector_store %arg10[%c0_22, %c0_23], %24 {strides = array<i32>} : memref<16x128xf32, #tpu.memory_space<vmem>>, vector<16x128xf32>,
    return
  }
  func.func @transform_0(%arg0: i32) -> (i32, i32) {
    %c0_i32 = arith.constant 0 : i32
    %c0_i32_0 = arith.constant 0 : i32
    return %arg0, %c0_i32 : i32, i32
  }
  func.func @transform_1(%arg0: i32) -> (i32, i32) {
    %c0_i32 = arith.constant 0 : i32
    %c0_i32_0 = arith.constant 0 : i32
    %c0_i32_1 = arith.constant 0 : i32
    return %c0_i32, %c0_i32_0 : i32, i32
  }
  func.func @transform_2(%arg0: i32) -> (i32, i32) {
    %c0_i32 = arith.constant 0 : i32
    %c0_i32_0 = arith.constant 0 : i32
    %c0_i32_1 = arith.constant 0 : i32
    return %c0_i32, %c0_i32_0 : i32, i32
  }
  func.func @transform_3(%arg0: i32) -> (i32, i32) {
    %c0_i32 = arith.constant 0 : i32
    %c0_i32_0 = arith.constant 0 : i32
    %c0_i32_1 = arith.constant 0 : i32
    return %c0_i32, %c0_i32_0 : i32, i32
  }
  func.func @transform_4(%arg0: i32) -> (i32, i32) {
    %c0_i32 = arith.constant 0 : i32
    %c0_i32_0 = arith.constant 0 : i32
    %c0_i32_1 = arith.constant 0 : i32
    return %c0_i32, %c0_i32_0 : i32, i32
  }
  func.func @transform_5(%arg0: i32) -> (i32, i32) {
    %c0_i32 = arith.constant 0 : i32
    %c0_i32_0 = arith.constant 0 : i32
    %c0_i32_1 = arith.constant 0 : i32
    return %c0_i32, %c0_i32_0 : i32, i32
  }
  func.func @transform_6(%arg0: i32) -> (i32, i32) {
    %c0_i32 = arith.constant 0 : i32
    %c0_i32_0 = arith.constant 0 : i32
    %c0_i32_1 = arith.constant 0 : i32
    return %c0_i32, %c0_i32_0 : i32, i32
  }
  func.func @transform_7(%arg0: i32) -> (i32, i32) {
    %c0_i32 = arith.constant 0 : i32
    %c0_i32_0 = arith.constant 0 : i32
    %c0_i32_1 = arith.constant 0 : i32
    return %c0_i32, %c0_i32_0 : i32, i32
  }
  func.func @transform_8(%arg0: i32) -> (i32, i32) {
    %c0_i32 = arith.constant 0 : i32
    %c0_i32_0 = arith.constant 0 : i32
    %c0_i32_1 = arith.constant 0 : i32
    return %c0_i32, %c0_i32_0 : i32, i32
  }
  func.func @transform_9(%arg0: i32) -> (i32, i32) {
    %c0_i32 = arith.constant 0 : i32
    %c0_i32_0 = arith.constant 0 : i32
    return %arg0, %c0_i32 : i32, i32
  }
}

module attributes {stable_mosaic.version = 11 : i64} {
  func.func @kernel(%arg0: i32, %arg1: memref<16x32xf32, #tpu.memory_space<vmem>>, %arg2: memref<32x64xf32, #tpu.memory_space<vmem>>, %arg3: memref<1x64xf32, #tpu.memory_space<vmem>>, %arg4: memref<64x64xf32, #tpu.memory_space<vmem>>, %arg5: memref<1x64xf32, #tpu.memory_space<vmem>>, %arg6: memref<64x64xf32, #tpu.memory_space<vmem>>, %arg7: memref<1x64xf32, #tpu.memory_space<vmem>>, %arg8: memref<64x128xf32, #tpu.memory_space<vmem>>, %arg9: memref<1x128xf32, #tpu.memory_space<vmem>>, %arg10: memref<16x128xf32, #tpu.memory_space<vmem>>) attributes {dimension_semantics = [#tpu.dimension_semantics<parallel>], iteration_bounds = array<i64: 1>, scalar_prefetch = 0 : i64, scratch_operands = 0 : i64, tpu.core_type = #tpu.core_type<tc>, window_params = [{transform_indices = @transform_0, window_bounds = array<i64: 16, 32>}, {pipeline_mode = #tpu.pipeline_mode<synchronous>, transform_indices = @transform_1, window_bounds = array<i64: 32, 64>}, {pipeline_mode = #tpu.pipeline_mode<synchronous>, transform_indices = @transform_2, window_bounds = array<i64: 1, 64>}, {pipeline_mode = #tpu.pipeline_mode<synchronous>, transform_indices = @transform_3, window_bounds = array<i64: 64, 64>}, {pipeline_mode = #tpu.pipeline_mode<synchronous>, transform_indices = @transform_4, window_bounds = array<i64: 1, 64>}, {pipeline_mode = #tpu.pipeline_mode<synchronous>, transform_indices = @transform_5, window_bounds = array<i64: 64, 64>}, {pipeline_mode = #tpu.pipeline_mode<synchronous>, transform_indices = @transform_6, window_bounds = array<i64: 1, 64>}, {pipeline_mode = #tpu.pipeline_mode<synchronous>, transform_indices = @transform_7, window_bounds = array<i64: 64, 128>}, {pipeline_mode = #tpu.pipeline_mode<synchronous>, transform_indices = @transform_8, window_bounds = array<i64: 1, 128>}, {transform_indices = @transform_9, window_bounds = array<i64: 16, 128>}]} {
    %c0 = arith.constant 0 : index
    %c0_0 = arith.constant 0 : index
    %0 = vector.load %arg1[%c0, %c0_0] : memref<16x32xf32, #tpu.memory_space<vmem>>, vector<16x32xf32>
    %c0_1 = arith.constant 0 : index
    %c0_2 = arith.constant 0 : index
    %1 = vector.load %arg2[%c0_1, %c0_2] : memref<32x64xf32, #tpu.memory_space<vmem>>, vector<32x64xf32>
    %cst = arith.constant dense<0.000000e+00> : vector<16x64xf32>
    %2 = tpu.matmul %0, %1, %cst {dimension_numbers = #tpu.dot_dimension_numbers<[1], [0], [0], [1], [0, 0, 1, 1], [], []>} : vector<16x32xf32>, vector<32x64xf32>, vector<16x64xf32> -> vector<16x64xf32>
    %c0_3 = arith.constant 0 : index
    %c0_4 = arith.constant 0 : index
    %3 = vector.load %arg3[%c0_3, %c0_4] : memref<1x64xf32, #tpu.memory_space<vmem>>, vector<1x64xf32>
    %4 = vector.broadcast %3 : vector<1x64xf32> to vector<16x64xf32>
    %5 = arith.addf %2, %4 : vector<16x64xf32>
    %c0_5 = arith.constant 0 : index
    %c0_6 = arith.constant 0 : index
    %6 = vector.load %arg4[%c0_5, %c0_6] : memref<64x64xf32, #tpu.memory_space<vmem>>, vector<64x64xf32>
    %cst_7 = arith.constant dense<0.000000e+00> : vector<16x64xf32>
    %7 = tpu.matmul %5, %6, %cst_7 {dimension_numbers = #tpu.dot_dimension_numbers<[1], [0], [0], [1], [0, 0, 1, 1], [], []>} : vector<16x64xf32>, vector<64x64xf32>, vector<16x64xf32> -> vector<16x64xf32>
    %c0_8 = arith.constant 0 : index
    %c0_9 = arith.constant 0 : index
    %8 = vector.load %arg5[%c0_8, %c0_9] : memref<1x64xf32, #tpu.memory_space<vmem>>, vector<1x64xf32>
    %9 = vector.broadcast %8 : vector<1x64xf32> to vector<16x64xf32>
    %10 = arith.addf %7, %9 : vector<16x64xf32>
    %cst_10 = arith.constant 0.000000e+00 : f32
    %11 = vector.broadcast %cst_10 : f32 to vector<16x64xf32>
    %12 = arith.maximumf %10, %11 : vector<16x64xf32>
    %c0_11 = arith.constant 0 : index
    %c0_12 = arith.constant 0 : index
    %13 = vector.load %arg6[%c0_11, %c0_12] : memref<64x64xf32, #tpu.memory_space<vmem>>, vector<64x64xf32>
    %cst_13 = arith.constant dense<0.000000e+00> : vector<16x64xf32>
    %14 = tpu.matmul %12, %13, %cst_13 {dimension_numbers = #tpu.dot_dimension_numbers<[1], [0], [0], [1], [0, 0, 1, 1], [], []>} : vector<16x64xf32>, vector<64x64xf32>, vector<16x64xf32> -> vector<16x64xf32>
    %c0_14 = arith.constant 0 : index
    %c0_15 = arith.constant 0 : index
    %15 = vector.load %arg7[%c0_14, %c0_15] : memref<1x64xf32, #tpu.memory_space<vmem>>, vector<1x64xf32>
    %16 = vector.broadcast %15 : vector<1x64xf32> to vector<16x64xf32>
    %17 = arith.addf %14, %16 : vector<16x64xf32>
    %cst_16 = arith.constant 0.000000e+00 : f32
    %18 = vector.broadcast %cst_16 : f32 to vector<16x64xf32>
    %19 = arith.maximumf %17, %18 : vector<16x64xf32>
    %c0_17 = arith.constant 0 : index
    %c0_18 = arith.constant 0 : index
    %20 = vector.load %arg8[%c0_17, %c0_18] : memref<64x128xf32, #tpu.memory_space<vmem>>, vector<64x128xf32>
    %cst_19 = arith.constant dense<0.000000e+00> : vector<16x128xf32>
    %21 = tpu.matmul %19, %20, %cst_19 {dimension_numbers = #tpu.dot_dimension_numbers<[1], [0], [0], [1], [0, 0, 1, 1], [], []>} : vector<16x64xf32>, vector<64x128xf32>, vector<16x128xf32> -> vector<16x128xf32>
    %c0_20 = arith.constant 0 : index
    %c0_21 = arith.constant 0 : index
    %22 = vector.load %arg9[%c0_20, %c0_21] : memref<1x128xf32, #tpu.memory_space<vmem>>, vector<1x128xf32>
    %23 = vector.broadcast %22 : vector<1x128xf32> to vector<16x128xf32>
    %24 = arith.addf %21, %23 : vector<16x128xf32>
    %c0_22 = arith.constant 0 : index
    %c0_23 = arith.constant 0 : index
    %25 = vector.load %arg10[%c0_22, %c0_23] : memref<16x128xf32, #tpu.memory_space<vmem>>, vector<16x128xf32>
    tpu.vector_store %arg10[%c0_22, %c0_23], %24 {strides = array<i32>} : memref<16x128xf32, #tpu.memory_space<vmem>>, vector<16x128xf32>,
    return
  }
  func.func @transform_0(%arg0: i32) -> (i32, i32) {
    %c0_i32 = arith.constant 0 : i32
    %c0_i32_0 = arith.constant 0 : i32
    return %arg0, %c0_i32 : i32, i32
  }
  func.func @transform_1(%arg0: i32) -> (i32, i32) {
    %c0_i32 = arith.constant 0 : i32
    %c0_i32_0 = arith.constant 0 : i32
    %c0_i32_1 = arith.constant 0 : i32
    return %c0_i32, %c0_i32_0 : i32, i32
  }
  func.func @transform_2(%arg0: i32) -> (i32, i32) {
    %c0_i32 = arith.constant 0 : i32
    %c0_i32_0 = arith.constant 0 : i32
    %c0_i32_1 = arith.constant 0 : i32
    return %c0_i32, %c0_i32_0 : i32, i32
  }
  func.func @transform_3(%arg0: i32) -> (i32, i32) {
    %c0_i32 = arith.constant 0 : i32
    %c0_i32_0 = arith.constant 0 : i32
    %c0_i32_1 = arith.constant 0 : i32
    return %c0_i32, %c0_i32_0 : i32, i32
  }
  func.func @transform_4(%arg0: i32) -> (i32, i32) {
    %c0_i32 = arith.constant 0 : i32
    %c0_i32_0 = arith.constant 0 : i32
    %c0_i32_1 = arith.constant 0 : i32
    return %c0_i32, %c0_i32_0 : i32, i32
  }
  func.func @transform_5(%arg0: i32) -> (i32, i32) {
    %c0_i32 = arith.constant 0 : i32
    %c0_i32_0 = arith.constant 0 : i32
    %c0_i32_1 = arith.constant 0 : i32
    return %c0_i32, %c0_i32_0 : i32, i32
  }
  func.func @transform_6(%arg0: i32) -> (i32, i32) {
    %c0_i32 = arith.constant 0 : i32
    %c0_i32_0 = arith.constant 0 : i32
    %c0_i32_1 = arith.constant 0 : i32
    return %c0_i32, %c0_i32_0 : i32, i32
  }
  func.func @transform_7(%arg0: i32) -> (i32, i32) {
    %c0_i32 = arith.constant 0 : i32
    %c0_i32_0 = arith.constant 0 : i32
    %c0_i32_1 = arith.constant 0 : i32
    return %c0_i32, %c0_i32_0 : i32, i32
  }
  func.func @transform_8(%arg0: i32) -> (i32, i32) {
    %c0_i32 = arith.constant 0 : i32
    %c0_i32_0 = arith.constant 0 : i32
    %c0_i32_1 = arith.constant 0 : i32
    return %c0_i32, %c0_i32_0 : i32, i32
  }
  func.func @transform_9(%arg0: i32) -> (i32, i32) {
    %c0_i32 = arith.constant 0 : i32
    %c0_i32_0 = arith.constant 0 : i32
    return %arg0, %c0_i32 : i32, i32
  }
}

</mosaic_0001>

<bundles_post_ra>
// kernel: tpu_custom_call.1
= control target key start
LH: loop header
LB: loop body
LE: loop exit
PB: predicated region body
PF: predicated region fallthrough
CT: control target
= control target key end

     0   :  { %14 = vsyncpa [#allocation3], 0  ;;  %s876_s0 = inlined_call_operand.hbm [shape: f32[16,32], index: 0, kind: input, shape index: {}]   ;;  %s877_s1 = inlined_call_operand.hbm [shape: f32[32,64], index: 1, kind: input, shape index: {}]   ;;  %s878_s2 = inlined_call_operand.vmem [shape: f32[1,64], index: 2, kind: input, shape index: {}]   ;;  %s879_s3 = inlined_call_operand.hbm [shape: f32[64,64], index: 3, kind: input, shape index: {}]   ;;  %s880_s4 = inlined_call_operand.vmem [shape: f32[1,64], index: 4, kind: input, shape index: {}]   ;;  %s881_s5 = inlined_call_operand.hbm [shape: f32[64,64], index: 5, kind: input, shape index: {}]   ;;  %s882_s6 = inlined_call_operand.vmem [shape: f32[1,64], index: 6, kind: input, shape index: {}]   ;;  %s883_s7 = inlined_call_operand.hbm [shape: f32[64,128], index: 7, kind: input, shape index: {}]   ;;  %s884_s8 = inlined_call_operand.vmem [shape: f32[1,128], index: 8, kind: input, shape index: {}]   ;;  %s885_s9 = inlined_call_operand.hbm [shape: f32[16,128], index: 9, kind: output, shape index: {}]  }
   0x1   :  { %15 = vsyncpa [#allocation6], 0 }
   0x2   :  { %16 = vsyncpa [#allocation9], 0 }
   0x3   :  { %17 = vsyncpa [#allocation4], 0  ;;  %s762_s30 = smov [#allocation5]   ;;  %s763_s11 = smov [#allocation8]  }
   0x4   :  { %s35_s10 = sshll.u32 %s762_s30, 4  ;;  %s63_s12 = sshll.u32 %s763_s11, 4  ;;  %s36_s10 = int_to_ptr.vmem [resolvable:$true] %s35_s10  ;;  %s64_s12 = int_to_ptr.vmem [resolvable:$true] %s63_s12 }
   0x5   :  { %s642_s13 = scalar_lea.vmem %s36_s10, 512  ;;  %p647_p1 = scmp.lt.s32.totalorder %s36_s10, %s36_s10 }
   0x6   :  { %p643_p0 = scmp.ne.s32.totalorder %s36_s10, %s642_s13  ;;  %p648_p2 = scmp.lt.s32.totalorder %s642_s13, %s642_s13 }
   0x8   :  { %p649_p3 = por %p648_p2, %p647_p1 }
   0xa   :  { %p650_p4 = pnand %p649_p3, %p643_p0 }
   0xc   :  { %653 = shalt.err (!%p650_p4)
}
   0xd   :  { %s764_s14 = smov 128   ;;  %s765_s15 = smov 8  }
   0xe   :  { %41 = dma.hbm_to_vmem [thread:$0]  %s877_s1, 512, %s36_s10, [#allocation6], %s764_s14, %s764_s14, %s765_s15  }
   0xf   :  { %s662_s18 = scalar_lea.vmem %s64_s12, 1024  ;;  %p667_p6 = scmp.lt.s32.totalorder %s64_s12, %s64_s12 }
  0x10   :  { %p663_p5 = scmp.ne.s32.totalorder %s64_s12, %s662_s18  ;;  %p668_p7 = scmp.lt.s32.totalorder %s662_s18, %s662_s18 }
  0x12   :  { %p669_p8 = por %p668_p7, %p667_p6 }
  0x14   :  { %p670_p9 = pnand %p669_p8, %p663_p5 }
  0x16   :  { %673 = shalt.err (!%p670_p9)
}
  0x17   :  { %69 = dma.hbm_to_vmem [thread:$0]  %s881_s5, 1024, %s64_s12, [#allocation9], %s764_s14, %s764_s14, %s765_s15  }
  0x18   :  { %s766_s21 = smov [#allocation2]   ;;  %s767_s23 = smov [#allocation7]  }
  0x19   :  { %s23_s22 = sshll.u32 %s766_s21, 4  ;;  %s49_s24 = sshll.u32 %s767_s23, 4  ;;  %s24_s22 = int_to_ptr.vmem [resolvable:$true] %s23_s22  ;;  %s50_s24 = int_to_ptr.vmem [resolvable:$true] %s49_s24 }
  0x1a   :  { %s682_s1 = scalar_lea.vmem %s24_s22, 256  ;;  %p687_p11 = scmp.lt.s32.totalorder %s24_s22, %s24_s22 }
  0x1b   :  { %p683_p10 = scmp.ne.s32.totalorder %s24_s22, %s682_s1  ;;  %p688_p12 = scmp.lt.s32.totalorder %s682_s1, %s682_s1 }
  0x1d   :  { %p689_p13 = por %p688_p12, %p687_p11 }
  0x1f   :  { %p690_p0 = pnand %p689_p13, %p683_p10 }
  0x21   :  { %693 = shalt.err (!%p690_p0)
}
  0x22   :  { %29 = dma.hbm_to_vmem [thread:$0]  %s876_s0, 256, %s24_s22, [#allocation3], %s764_s14, %s764_s14, %s765_s15  }
  0x23   :  { %s702_s5 = scalar_lea.vmem %s50_s24, 1024  ;;  %p707_p2 = scmp.lt.s32.totalorder %s50_s24, %s50_s24 }
  0x24   :  { %p703_p1 = scmp.ne.s32.totalorder %s50_s24, %s702_s5  ;;  %p708_p3 = scmp.lt.s32.totalorder %s702_s5, %s702_s5 }
  0x26   :  { %p709_p4 = por %p708_p3, %p707_p2 }
  0x28   :  { %p710_p5 = pnand %p709_p4, %p703_p1 }
  0x2a   :  { %713 = shalt.err (!%p710_p5)
}
  0x2b   :  { %55 = dma.hbm_to_vmem [thread:$0]  %s879_s3, 1024, %s50_s24, [#allocation6], %s764_s14, %s764_s14, %s765_s15  }
  0x2c   :  { %s768_s29 = smov [#allocation10]  }
  0x2d   :  { %s77_s30 = sshll.u32 %s768_s29, 4  ;;  %s78_s30 = int_to_ptr.vmem [resolvable:$true] %s77_s30 }
  0x2e   :  { %s722_s10 = scalar_lea.vmem %s78_s30, 1024  ;;  %p727_p7 = scmp.lt.s32.totalorder %s78_s30, %s78_s30 }
  0x2f   :  { %p723_p6 = scmp.ne.s32.totalorder %s78_s30, %s722_s10  ;;  %p728_p8 = scmp.lt.s32.totalorder %s722_s10, %s722_s10 }
  0x31   :  { %p729_p9 = por %p728_p8, %p727_p7 }
  0x33   :  { %p730_p10 = pnand %p729_p9, %p723_p6 }
  0x35   :  { %733 = shalt.err (!%p730_p10)
}
  0x36   :  { %83 = dma.hbm_to_vmem [thread:$0]  %s883_s7, 1024, %s78_s30, [#allocation9], %s764_s14, %s764_s14, %s765_s15  }
  0x37   :  { %754 = dma.done.wait [#allocation3], 256  }
  0x38   :  { %755 = vsyncadd [#allocation3], 4294967040 }
  0x39   :  { %756 = dma.done.wait [#allocation6], 1536  }
  0x3a   :  { %757 = vsyncadd [#allocation6], 4294965760 }
  0x3b   :  { %758 = dma.done.wait [#allocation9], 2048  }
  0x3c   :  { %759 = vsyncadd [#allocation9], 4294965248  ;;  %vm114_vm0 = vcmask 261120   ;;  %v106_v0 = vld [vmem:[#allocation5 + $0x18] sm:$0xff]  ;;  %v105_v1 = vld [vmem:[#allocation5 + $0x10] sm:$0xff]  ;;  %vm211_vm1 = vcmask 523264  }
  0x3d   :  { %558 = vmatprep.subr.mxu0 %v106_v0  ;;  %v101_v2 = vld [vmem:[#allocation2] sm:$0xff]  ;;  %v104_v3 = vld [vmem:[#allocation5 + $0x8] sm:$0xff]  ;;  %v203_v4 = vld [vmem:[#allocation7 + $0x38] sm:$0xff]  ;;  %s769_s18 = smov [#allocation11]  }
  0x3e   :  { %559 = vmatpush3.msra.mxu0 %v106_v0  ;;  %566 = vmatprep.mubr.msk.f32.mxu0 %vm114_vm0, %v101_v2  ;;  %v202_v5 = vld [vmem:[#allocation7 + $0x30] sm:$0xff]  ;;  %v103_v6 = vld [vmem:[#allocation5] sm:$0xff]  ;;  %v201_v7 = vld [vmem:[#allocation7 + $0x28] sm:$0xff]  ;;  %s496_s19 = sshll.u32 %s769_s18, 4  ;;  %s497_s19 = int_to_ptr.vmem [resolvable:$true] %s496_s19 }
  0x3f   :  { %560 = vmatprep.subr.mxu0 %v105_v1  ;;  %569 = vmatprep.subr.mxu1 %v203_v4  ;;  %v102_v8 = vld [vmem:[#allocation2 + $0x8] sm:$0xff]  ;;  %v200_v9 = vld [vmem:[#allocation7 + $0x20] sm:$0xff]  ;;  %v198_v11 = vld [vmem:[#allocation7 + $0x10] sm:$0xff]  ;;  %p739_p12 = scmp.lt.s32.totalorder %s497_s19, %s497_s19 }
  0x40   :  { %561 = vmatpush3.msra.mxu0 %v105_v1  ;;  %570 = vmatpush3.msra.mxu1 %v203_v4  ;;  %v199_v10 = vld [vmem:[#allocation7 + $0x18] sm:$0xff]  ;;  %v197_v12 = vld [vmem:[#allocation7 + $0x8] sm:$0xff]  ;;  %v196_v13 = vld [vmem:[#allocation7] sm:$0xff] }
  0x41   :  { %562 = vmatprep.subr.mxu0 %v104_v3  ;;  %571 = vmatprep.subr.mxu1 %v202_v5  ;;  %v302_v14 = vld [vmem:[#allocation8 + $0x38] sm:$0xff]  ;;  %v301_v15 = vld [vmem:[#allocation8 + $0x30] sm:$0xff]  ;;  %v300_v16 = vld [vmem:[#allocation8 + $0x28] sm:$0xff] }
  0x42   :  { %563 = vmatpush3.msra.mxu0 %v104_v3  ;;  %572 = vmatpush3.msra.mxu1 %v202_v5  ;;  %v299_v17 = vld [vmem:[#allocation8 + $0x20] sm:$0xff]  ;;  %v510_v19 = vld [vmem:[%s878_s2] ss:$0 sm:$0xff]  ;;  %v298_v23 = vld [vmem:[#allocation8 + $0x18] sm:$0xff] }
  0x43   :  { %564 = vmatprep.subr.mxu0 %v103_v6  ;;  %573 = vmatprep.subr.mxu1 %v201_v7  ;;  %v297_v24 = vld [vmem:[#allocation8 + $0x10] sm:$0xff]  ;;  %v296_v25 = vld [vmem:[#allocation8 + $0x8] sm:$0xff]  ;;  %v295_v26 = vld [vmem:[#allocation8] sm:$0xff] }
  0x44   :  { %565 = vmatpush3.msra.mxu0 %v103_v6  ;;  %574 = vmatpush3.msra.mxu1 %v201_v7  ;;  %v400_v27 = vld [vmem:[#allocation10 + $0x38] sm:$0xff]  ;;  %v399_v28 = vld [vmem:[#allocation10 + $0x30] sm:$0xff]  ;;  %v398_v29 = vld [vmem:[#allocation10 + $0x28] sm:$0xff] }
  0x45   :  { %567 = vmatmul.mubr.msk.f32.vlgmr.msra.gmra.mxu0 %vm114_vm0, %v102_v8  ;;  %575 = vmatprep.subr.mxu1 %v200_v9  ;;  %v397_v30 = vld [vmem:[#allocation10 + $0x20] sm:$0xff]  ;;  %v513_v31 = vld [vmem:[%s880_s4] ss:$0 sm:$0xff]  ;;  %v396_v38 = vld [vmem:[#allocation10 + $0x18] sm:$0xff] }
  0x46   :  { %576 = vmatpush3.msra.mxu1 %v200_v9  ;;  %588 = vmatprep.subr.mxu0 %v302_v14  ;;  %v395_v39 = vld [vmem:[#allocation10 + $0x10] sm:$0xff]  ;;  %v394_v40 = vld [vmem:[#allocation10 + $0x8] sm:$0xff]  ;;  %v393_v41 = vld [vmem:[#allocation10] sm:$0xff] }
  0x47   :  { %577 = vmatprep.subr.mxu1 %v199_v10  ;;  %589 = vmatpush3.msra.mxu0 %v302_v14  ;;  %v516_v42 = vld [vmem:[%s882_s6] ss:$0 sm:$0xff]  ;;  %s734_s6 = scalar_lea.vmem %s497_s19, 256 }
  0x48   :  { %578 = vmatpush3.msra.mxu1 %v199_v10  ;;  %590 = vmatprep.subr.mxu0 %v301_v15  ;;  %v519_v49 = vld [vmem:[%s884_s8] ss:$0 sm:$0xff]  ;;  %p735_p11 = scmp.ne.s32.totalorder %s497_s19, %s734_s6  ;;  %p740_p13 = scmp.lt.s32.totalorder %s734_s6, %s734_s6 }
  0x49   :  { %579 = vmatprep.subr.mxu1 %v198_v11  ;;  %591 = vmatpush3.msra.mxu0 %v301_v15 }
  0x4a   :  { %580 = vmatpush3.msra.mxu1 %v198_v11  ;;  %592 = vmatprep.subr.mxu0 %v300_v16  ;;  %p741_p0 = por %p740_p13, %p739_p12 }
  0x4b   :  { %581 = vmatprep.subr.mxu1 %v197_v12  ;;  %593 = vmatpush3.msra.mxu0 %v300_v16 }
  0x4c   :  { %582 = vmatpush3.msra.mxu1 %v197_v12  ;;  %594 = vmatprep.subr.mxu0 %v299_v17  ;;  %p742_p1 = pnand %p741_p0, %p735_p11 }
  0x4d   :  { %583 = vmatprep.subr.mxu1 %v196_v13  ;;  %595 = vmatpush3.msra.mxu0 %v299_v17 }
  0x4e   :  { %584 = vmatpush3.msra.mxu1 %v196_v13  ;;  %596 = vmatprep.subr.mxu0 %v298_v23 }
  0x4f   :  { %597 = vmatpush3.msra.mxu0 %v298_v23  ;;  %607 = vmatprep.subr.mxu1 %v400_v27 }
  0x50   :  { %598 = vmatprep.subr.mxu0 %v297_v24 }
  0x51   :  { %599 = vmatpush3.msra.mxu0 %v297_v24 }
  0x52   :  { %600 = vmatprep.subr.mxu0 %v296_v25 }
  0x53   :  { %601 = vmatpush3.msra.mxu0 %v296_v25 }
  0x54   :  { %602 = vmatprep.subr.mxu0 %v295_v26 }
  0x55   :  { %603 = vmatpush3.msra.mxu0 %v295_v26 }
 0x105   :  { %v568_v18 = vpop.f32.mrf.mxu0 }
 0x106   :  { %v193_v22 = vadd.f32 %v568_v18, %v510_v19 }
 0x107   :  { %v187_v20 = vpop.f32.mrf.mxu0 }
 0x108   :  { %v188_v21 = vadd.f32 %v510_v19, %v187_v20 }
 0x10a   :  { %585 = vmatprep.mubr.msk.f32.mxu1 %vm211_vm1, %v188_v21 }
 0x10b   :  { %586 = vmatmul.mubr.msk.f32.vlgmr.msra.gmra.mxu1 %vm211_vm1, %v193_v22 }
 0x10c   :  { %608 = vmatpush3.msra.mxu1 %v400_v27 }
 0x10d   :  { %609 = vmatprep.subr.mxu1 %v399_v28 }
 0x10e   :  { %610 = vmatpush3.msra.mxu1 %v399_v28 }
 0x10f   :  { %611 = vmatprep.subr.mxu1 %v398_v29 }
 0x110   :  { %612 = vmatpush3.msra.mxu1 %v398_v29 }
 0x111   :  { %613 = vmatprep.subr.mxu1 %v397_v30 }
 0x112   :  { %614 = vmatpush3.msra.mxu1 %v397_v30 }
 0x113   :  { %615 = vmatprep.subr.mxu1 %v396_v38 }
 0x114   :  { %616 = vmatpush3.msra.mxu1 %v396_v38 }
 0x115   :  { %617 = vmatprep.subr.mxu1 %v395_v39 }
 0x116   :  { %618 = vmatpush3.msra.mxu1 %v395_v39 }
 0x117   :  { %619 = vmatprep.subr.mxu1 %v394_v40 }
 0x118   :  { %620 = vmatpush3.msra.mxu1 %v394_v40 }
 0x119   :  { %621 = vmatprep.subr.mxu1 %v393_v41 }
 0x11a   :  { %622 = vmatpush3.msra.mxu1 %v393_v41 }
 0x1cb   :  { %v587_v32 = vpop.f32.mrf.mxu1 }
 0x1cc   :  { %v290_v33 = vadd.f32 %v587_v32, %v513_v31 }
 0x1cd   :  { %v284_v34 = vpop.f32.mrf.mxu1 }
 0x1ce   :  { %v285_v35 = vadd.f32 %v513_v31, %v284_v34  ;;  %v294_v37 = vmax.f32 %v290_v33, 0.0 }
 0x1d0   :  { %v293_v36 = vmax.f32 %v285_v35, 0.0 }
 0x1d2   :  { %604 = vmatprep.mubr.msk.f32.mxu0 %vm211_vm1, %v293_v36 }
 0x1d3   :  { %605 = vmatmul.mubr.msk.f32.vlgmr.msra.gmra.mxu0 %vm211_vm1, %v294_v37 }
 0x293   :  { %v606_v43 = vpop.f32.mrf.mxu0 }
 0x294   :  { %v388_v44 = vadd.f32 %v606_v43, %v516_v42 }
 0x295   :  { %v382_v45 = vpop.f32.mrf.mxu0 }
 0x296   :  { %v383_v46 = vadd.f32 %v516_v42, %v382_v45  ;;  %v392_v48 = vmax.f32 %v388_v44, 0.0 }
 0x298   :  { %v391_v47 = vmax.f32 %v383_v46, 0.0 }
 0x29a   :  { %623 = vmatprep.mubr.msk.f32.mxu1 %vm211_vm1, %v391_v47 }
 0x29b   :  { %624 = vmatmul.mubr.msk.f32.vlgmr.msra.gmra.mxu1 %vm211_vm1, %v392_v48 }
 0x35b   :  { %v625_v50 = vpop.f32.mrf.mxu1 }
 0x35c   :  { %v486_v51 = vadd.f32 %v625_v50, %v519_v49 }
 0x35d   :  { %v480_v52 = vpop.f32.mrf.mxu1 }
 0x35e   :  { %490 = vst [vmem:[#allocation11 + $0x8] sm:$0xff] %v486_v51  ;;  %v481_v53 = vadd.f32 %v519_v49, %v480_v52 }
 0x360   :  { %489 = vst [vmem:[#allocation11] sm:$0xff] %v481_v53 }
 0x361   :  { %745 = shalt.err (!%p742_p1)
}
 0x362   :  { %502 = dma.vmem_to_hbm [thread:$0]  %s497_s19, 256, %s885_s9, [#allocation4], %s764_s14, %s764_s14, %s765_s15  }
 0x363   :  { %760 = dma.done.wait [#allocation4], 256  }
 0x364   :  { %761 = vsyncadd [#allocation4], 4294967040 }
 0x365   :  { %506 = vsyncpa [#allocation3], 1 }
 0x366   :  { %507 = vsyncpa [#allocation6], 1 }
 0x367   :  { %508 = vsyncpa [#allocation9], 1 }
 0x368   :  { %509 = vsyncpa [#allocation4], 1 }

// kernel: tpu_custom_call.1
= control target key start
LH: loop header
LB: loop body
LE: loop exit
PB: predicated region body
PF: predicated region fallthrough
CT: control target
= control target key end

     0   :  { %14 = vsyncpa [#allocation3], 0  ;;  %s876_s0 = inlined_call_operand.hbm [shape: f32[16,32], index: 0, kind: input, shape index: {}]   ;;  %s877_s1 = inlined_call_operand.hbm [shape: f32[32,64], index: 1, kind: input, shape index: {}]   ;;  %s878_s2 = inlined_call_operand.vmem [shape: f32[1,64], index: 2, kind: input, shape index: {}]   ;;  %s879_s3 = inlined_call_operand.hbm [shape: f32[64,64], index: 3, kind: input, shape index: {}]   ;;  %s880_s4 = inlined_call_operand.vmem [shape: f32[1,64], index: 4, kind: input, shape index: {}]   ;;  %s881_s5 = inlined_call_operand.hbm [shape: f32[64,64], index: 5, kind: input, shape index: {}]   ;;  %s882_s6 = inlined_call_operand.vmem [shape: f32[1,64], index: 6, kind: input, shape index: {}]   ;;  %s883_s7 = inlined_call_operand.hbm [shape: f32[64,128], index: 7, kind: input, shape index: {}]   ;;  %s884_s8 = inlined_call_operand.vmem [shape: f32[1,128], index: 8, kind: input, shape index: {}]   ;;  %s885_s9 = inlined_call_operand.hbm [shape: f32[16,128], index: 9, kind: output, shape index: {}]  }
   0x1   :  { %15 = vsyncpa [#allocation6], 0 }
   0x2   :  { %16 = vsyncpa [#allocation9], 0 }
   0x3   :  { %17 = vsyncpa [#allocation4], 0  ;;  %s762_s30 = smov [#allocation5]   ;;  %s763_s11 = smov [#allocation8]  }
   0x4   :  { %s35_s10 = sshll.u32 %s762_s30, 4  ;;  %s63_s12 = sshll.u32 %s763_s11, 4  ;;  %s36_s10 = int_to_ptr.vmem [resolvable:$true] %s35_s10  ;;  %s64_s12 = int_to_ptr.vmem [resolvable:$true] %s63_s12 }
   0x5   :  { %s642_s13 = scalar_lea.vmem %s36_s10, 512  ;;  %p647_p1 = scmp.lt.s32.totalorder %s36_s10, %s36_s10 }
   0x6   :  { %p643_p0 = scmp.ne.s32.totalorder %s36_s10, %s642_s13  ;;  %p648_p2 = scmp.lt.s32.totalorder %s642_s13, %s642_s13 }
   0x8   :  { %p649_p3 = por %p648_p2, %p647_p1 }
   0xa   :  { %p650_p4 = pnand %p649_p3, %p643_p0 }
   0xc   :  { %653 = shalt.err (!%p650_p4)
}
   0xd   :  { %s764_s14 = smov 128   ;;  %s765_s15 = smov 8  }
   0xe   :  { %41 = dma.hbm_to_vmem [thread:$0]  %s877_s1, 512, %s36_s10, [#allocation6], %s764_s14, %s764_s14, %s765_s15  }
   0xf   :  { %s662_s18 = scalar_lea.vmem %s64_s12, 1024  ;;  %p667_p6 = scmp.lt.s32.totalorder %s64_s12, %s64_s12 }
  0x10   :  { %p663_p5 = scmp.ne.s32.totalorder %s64_s12, %s662_s18  ;;  %p668_p7 = scmp.lt.s32.totalorder %s662_s18, %s662_s18 }
  0x12   :  { %p669_p8 = por %p668_p7, %p667_p6 }
  0x14   :  { %p670_p9 = pnand %p669_p8, %p663_p5 }
  0x16   :  { %673 = shalt.err (!%p670_p9)
}
  0x17   :  { %69 = dma.hbm_to_vmem [thread:$0]  %s881_s5, 1024, %s64_s12, [#allocation9], %s764_s14, %s764_s14, %s765_s15  }
  0x18   :  { %s766_s21 = smov [#allocation2]   ;;  %s767_s23 = smov [#allocation7]  }
  0x19   :  { %s23_s22 = sshll.u32 %s766_s21, 4  ;;  %s49_s24 = sshll.u32 %s767_s23, 4  ;;  %s24_s22 = int_to_ptr.vmem [resolvable:$true] %s23_s22  ;;  %s50_s24 = int_to_ptr.vmem [resolvable:$true] %s49_s24 }
  0x1a   :  { %s682_s1 = scalar_lea.vmem %s24_s22, 256  ;;  %p687_p11 = scmp.lt.s32.totalorder %s24_s22, %s24_s22 }
  0x1b   :  { %p683_p10 = scmp.ne.s32.totalorder %s24_s22, %s682_s1  ;;  %p688_p12 = scmp.lt.s32.totalorder %s682_s1, %s682_s1 }
  0x1d   :  { %p689_p13 = por %p688_p12, %p687_p11 }
  0x1f   :  { %p690_p0 = pnand %p689_p13, %p683_p10 }
  0x21   :  { %693 = shalt.err (!%p690_p0)
}
  0x22   :  { %29 = dma.hbm_to_vmem [thread:$0]  %s876_s0, 256, %s24_s22, [#allocation3], %s764_s14, %s764_s14, %s765_s15  }
  0x23   :  { %s702_s5 = scalar_lea.vmem %s50_s24, 1024  ;;  %p707_p2 = scmp.lt.s32.totalorder %s50_s24, %s50_s24 }
  0x24   :  { %p703_p1 = scmp.ne.s32.totalorder %s50_s24, %s702_s5  ;;  %p708_p3 = scmp.lt.s32.totalorder %s702_s5, %s702_s5 }
  0x26   :  { %p709_p4 = por %p708_p3, %p707_p2 }
  0x28   :  { %p710_p5 = pnand %p709_p4, %p703_p1 }
  0x2a   :  { %713 = shalt.err (!%p710_p5)
}
  0x2b   :  { %55 = dma.hbm_to_vmem [thread:$0]  %s879_s3, 1024, %s50_s24, [#allocation6], %s764_s14, %s764_s14, %s765_s15  }
  0x2c   :  { %s768_s29 = smov [#allocation10]  }
  0x2d   :  { %s77_s30 = sshll.u32 %s768_s29, 4  ;;  %s78_s30 = int_to_ptr.vmem [resolvable:$true] %s77_s30 }
  0x2e   :  { %s722_s10 = scalar_lea.vmem %s78_s30, 1024  ;;  %p727_p7 = scmp.lt.s32.totalorder %s78_s30, %s78_s30 }
  0x2f   :  { %p723_p6 = scmp.ne.s32.totalorder %s78_s30, %s722_s10  ;;  %p728_p8 = scmp.lt.s32.totalorder %s722_s10, %s722_s10 }
  0x31   :  { %p729_p9 = por %p728_p8, %p727_p7 }
  0x33   :  { %p730_p10 = pnand %p729_p9, %p723_p6 }
  0x35   :  { %733 = shalt.err (!%p730_p10)
}
  0x36   :  { %83 = dma.hbm_to_vmem [thread:$0]  %s883_s7, 1024, %s78_s30, [#allocation9], %s764_s14, %s764_s14, %s765_s15  }
  0x37   :  { %754 = dma.done.wait [#allocation3], 256  }
  0x38   :  { %755 = vsyncadd [#allocation3], 4294967040 }
  0x39   :  { %756 = dma.done.wait [#allocation6], 1536  }
  0x3a   :  { %757 = vsyncadd [#allocation6], 4294965760 }
  0x3b   :  { %758 = dma.done.wait [#allocation9], 2048  }
  0x3c   :  { %759 = vsyncadd [#allocation9], 4294965248  ;;  %vm114_vm0 = vcmask 261120   ;;  %v106_v0 = vld [vmem:[#allocation5 + $0x18] sm:$0xff]  ;;  %v105_v1 = vld [vmem:[#allocation5 + $0x10] sm:$0xff]  ;;  %vm211_vm1 = vcmask 523264  }
  0x3d   :  { %558 = vmatprep.subr.mxu0 %v106_v0  ;;  %v101_v2 = vld [vmem:[#allocation2] sm:$0xff]  ;;  %v104_v3 = vld [vmem:[#allocation5 + $0x8] sm:$0xff]  ;;  %v203_v4 = vld [vmem:[#allocation7 + $0x38] sm:$0xff]  ;;  %s769_s18 = smov [#allocation11]  }
  0x3e   :  { %559 = vmatpush3.msra.mxu0 %v106_v0  ;;  %566 = vmatprep.mubr.msk.f32.mxu0 %vm114_vm0, %v101_v2  ;;  %v202_v5 = vld [vmem:[#allocation7 + $0x30] sm:$0xff]  ;;  %v103_v6 = vld [vmem:[#allocation5] sm:$0xff]  ;;  %v201_v7 = vld [vmem:[#allocation7 + $0x28] sm:$0xff]  ;;  %s496_s19 = sshll.u32 %s769_s18, 4  ;;  %s497_s19 = int_to_ptr.vmem [resolvable:$true] %s496_s19 }
  0x3f   :  { %560 = vmatprep.subr.mxu0 %v105_v1  ;;  %569 = vmatprep.subr.mxu1 %v203_v4  ;;  %v102_v8 = vld [vmem:[#allocation2 + $0x8] sm:$0xff]  ;;  %v200_v9 = vld [vmem:[#allocation7 + $0x20] sm:$0xff]  ;;  %v198_v11 = vld [vmem:[#allocation7 + $0x10] sm:$0xff]  ;;  %p739_p12 = scmp.lt.s32.totalorder %s497_s19, %s497_s19 }
  0x40   :  { %561 = vmatpush3.msra.mxu0 %v105_v1  ;;  %570 = vmatpush3.msra.mxu1 %v203_v4  ;;  %v199_v10 = vld [vmem:[#allocation7 + $0x18] sm:$0xff]  ;;  %v197_v12 = vld [vmem:[#allocation7 + $0x8] sm:$0xff]  ;;  %v196_v13 = vld [vmem:[#allocation7] sm:$0xff] }
  0x41   :  { %562 = vmatprep.subr.mxu0 %v104_v3  ;;  %571 = vmatprep.subr.mxu1 %v202_v5  ;;  %v302_v14 = vld [vmem:[#allocation8 + $0x38] sm:$0xff]  ;;  %v301_v15 = vld [vmem:[#allocation8 + $0x30] sm:$0xff]  ;;  %v300_v16 = vld [vmem:[#allocation8 + $0x28] sm:$0xff] }
  0x42   :  { %563 = vmatpush3.msra.mxu0 %v104_v3  ;;  %572 = vmatpush3.msra.mxu1 %v202_v5  ;;  %v299_v17 = vld [vmem:[#allocation8 + $0x20] sm:$0xff]  ;;  %v510_v19 = vld [vmem:[%s878_s2] ss:$0 sm:$0xff]  ;;  %v298_v23 = vld [vmem:[#allocation8 + $0x18] sm:$0xff] }
  0x43   :  { %564 = vmatprep.subr.mxu0 %v103_v6  ;;  %573 = vmatprep.subr.mxu1 %v201_v7  ;;  %v297_v24 = vld [vmem:[#allocation8 + $0x10] sm:$0xff]  ;;  %v296_v25 = vld [vmem:[#allocation8 + $0x8] sm:$0xff]  ;;  %v295_v26 = vld [vmem:[#allocation8] sm:$0xff] }
  0x44   :  { %565 = vmatpush3.msra.mxu0 %v103_v6  ;;  %574 = vmatpush3.msra.mxu1 %v201_v7  ;;  %v400_v27 = vld [vmem:[#allocation10 + $0x38] sm:$0xff]  ;;  %v399_v28 = vld [vmem:[#allocation10 + $0x30] sm:$0xff]  ;;  %v398_v29 = vld [vmem:[#allocation10 + $0x28] sm:$0xff] }
  0x45   :  { %567 = vmatmul.mubr.msk.f32.vlgmr.msra.gmra.mxu0 %vm114_vm0, %v102_v8  ;;  %575 = vmatprep.subr.mxu1 %v200_v9  ;;  %v397_v30 = vld [vmem:[#allocation10 + $0x20] sm:$0xff]  ;;  %v513_v31 = vld [vmem:[%s880_s4] ss:$0 sm:$0xff]  ;;  %v396_v38 = vld [vmem:[#allocation10 + $0x18] sm:$0xff] }
  0x46   :  { %576 = vmatpush3.msra.mxu1 %v200_v9  ;;  %588 = vmatprep.subr.mxu0 %v302_v14  ;;  %v395_v39 = vld [vmem:[#allocation10 + $0x10] sm:$0xff]  ;;  %v394_v40 = vld [vmem:[#allocation10 + $0x8] sm:$0xff]  ;;  %v393_v41 = vld [vmem:[#allocation10] sm:$0xff] }
  0x47   :  { %577 = vmatprep.subr.mxu1 %v199_v10  ;;  %589 = vmatpush3.msra.mxu0 %v302_v14  ;;  %v516_v42 = vld [vmem:[%s882_s6] ss:$0 sm:$0xff]  ;;  %s734_s6 = scalar_lea.vmem %s497_s19, 256 }
  0x48   :  { %578 = vmatpush3.msra.mxu1 %v199_v10  ;;  %590 = vmatprep.subr.mxu0 %v301_v15  ;;  %v519_v49 = vld [vmem:[%s884_s8] ss:$0 sm:$0xff]  ;;  %p735_p11 = scmp.ne.s32.totalorder %s497_s19, %s734_s6  ;;  %p740_p13 = scmp.lt.s32.totalorder %s734_s6, %s734_s6 }
  0x49   :  { %579 = vmatprep.subr.mxu1 %v198_v11  ;;  %591 = vmatpush3.msra.mxu0 %v301_v15 }
  0x4a   :  { %580 = vmatpush3.msra.mxu1 %v198_v11  ;;  %592 = vmatprep.subr.mxu0 %v300_v16  ;;  %p741_p0 = por %p740_p13, %p739_p12 }
  0x4b   :  { %581 = vmatprep.subr.mxu1 %v197_v12  ;;  %593 = vmatpush3.msra.mxu0 %v300_v16 }
  0x4c   :  { %582 = vmatpush3.msra.mxu1 %v197_v12  ;;  %594 = vmatprep.subr.mxu0 %v299_v17  ;;  %p742_p1 = pnand %p741_p0, %p735_p11 }
  0x4d   :  { %583 = vmatprep.subr.mxu1 %v196_v13  ;;  %595 = vmatpush3.msra.mxu0 %v299_v17 }
  0x4e   :  { %584 = vmatpush3.msra.mxu1 %v196_v13  ;;  %596 = vmatprep.subr.mxu0 %v298_v23 }
  0x4f   :  { %597 = vmatpush3.msra.mxu0 %v298_v23  ;;  %607 = vmatprep.subr.mxu1 %v400_v27 }
  0x50   :  { %598 = vmatprep.subr.mxu0 %v297_v24 }
  0x51   :  { %599 = vmatpush3.msra.mxu0 %v297_v24 }
  0x52   :  { %600 = vmatprep.subr.mxu0 %v296_v25 }
  0x53   :  { %601 = vmatpush3.msra.mxu0 %v296_v25 }
  0x54   :  { %602 = vmatprep.subr.mxu0 %v295_v26 }
  0x55   :  { %603 = vmatpush3.msra.mxu0 %v295_v26 }
 0x105   :  { %v568_v18 = vpop.f32.mrf.mxu0 }
 0x106   :  { %v193_v22 = vadd.f32 %v568_v18, %v510_v19 }
 0x107   :  { %v187_v20 = vpop.f32.mrf.mxu0 }
 0x108   :  { %v188_v21 = vadd.f32 %v510_v19, %v187_v20 }
 0x10a   :  { %585 = vmatprep.mubr.msk.f32.mxu1 %vm211_vm1, %v188_v21 }
 0x10b   :  { %586 = vmatmul.mubr.msk.f32.vlgmr.msra.gmra.mxu1 %vm211_vm1, %v193_v22 }
 0x10c   :  { %608 = vmatpush3.msra.mxu1 %v400_v27 }
 0x10d   :  { %609 = vmatprep.subr.mxu1 %v399_v28 }
 0x10e   :  { %610 = vmatpush3.msra.mxu1 %v399_v28 }
 0x10f   :  { %611 = vmatprep.subr.mxu1 %v398_v29 }
 0x110   :  { %612 = vmatpush3.msra.mxu1 %v398_v29 }
 0x111   :  { %613 = vmatprep.subr.mxu1 %v397_v30 }
 0x112   :  { %614 = vmatpush3.msra.mxu1 %v397_v30 }
 0x113   :  { %615 = vmatprep.subr.mxu1 %v396_v38 }
 0x114   :  { %616 = vmatpush3.msra.mxu1 %v396_v38 }
 0x115   :  { %617 = vmatprep.subr.mxu1 %v395_v39 }
 0x116   :  { %618 = vmatpush3.msra.mxu1 %v395_v39 }
 0x117   :  { %619 = vmatprep.subr.mxu1 %v394_v40 }
 0x118   :  { %620 = vmatpush3.msra.mxu1 %v394_v40 }
 0x119   :  { %621 = vmatprep.subr.mxu1 %v393_v41 }
 0x11a   :  { %622 = vmatpush3.msra.mxu1 %v393_v41 }
 0x1cb   :  { %v587_v32 = vpop.f32.mrf.mxu1 }
 0x1cc   :  { %v290_v33 = vadd.f32 %v587_v32, %v513_v31 }
 0x1cd   :  { %v284_v34 = vpop.f32.mrf.mxu1 }
 0x1ce   :  { %v285_v35 = vadd.f32 %v513_v31, %v284_v34  ;;  %v294_v37 = vmax.f32 %v290_v33, 0.0 }
 0x1d0   :  { %v293_v36 = vmax.f32 %v285_v35, 0.0 }
 0x1d2   :  { %604 = vmatprep.mubr.msk.f32.mxu0 %vm211_vm1, %v293_v36 }
 0x1d3   :  { %605 = vmatmul.mubr.msk.f32.vlgmr.msra.gmra.mxu0 %vm211_vm1, %v294_v37 }
 0x293   :  { %v606_v43 = vpop.f32.mrf.mxu0 }
 0x294   :  { %v388_v44 = vadd.f32 %v606_v43, %v516_v42 }
 0x295   :  { %v382_v45 = vpop.f32.mrf.mxu0 }
 0x296   :  { %v383_v46 = vadd.f32 %v516_v42, %v382_v45  ;;  %v392_v48 = vmax.f32 %v388_v44, 0.0 }
 0x298   :  { %v391_v47 = vmax.f32 %v383_v46, 0.0 }
 0x29a   :  { %623 = vmatprep.mubr.msk.f32.mxu1 %vm211_vm1, %v391_v47 }
 0x29b   :  { %624 = vmatmul.mubr.msk.f32.vlgmr.msra.gmra.mxu1 %vm211_vm1, %v392_v48 }
 0x35b   :  { %v625_v50 = vpop.f32.mrf.mxu1 }
 0x35c   :  { %v486_v51 = vadd.f32 %v625_v50, %v519_v49 }
 0x35d   :  { %v480_v52 = vpop.f32.mrf.mxu1 }
 0x35e   :  { %490 = vst [vmem:[#allocation11 + $0x8] sm:$0xff] %v486_v51  ;;  %v481_v53 = vadd.f32 %v519_v49, %v480_v52 }
 0x360   :  { %489 = vst [vmem:[#allocation11] sm:$0xff] %v481_v53 }
 0x361   :  { %745 = shalt.err (!%p742_p1)
}
 0x362   :  { %502 = dma.vmem_to_hbm [thread:$0]  %s497_s19, 256, %s885_s9, [#allocation4], %s764_s14, %s764_s14, %s765_s15  }
 0x363   :  { %760 = dma.done.wait [#allocation4], 256  }
 0x364   :  { %761 = vsyncadd [#allocation4], 4294967040 }
 0x365   :  { %506 = vsyncpa [#allocation3], 1 }
 0x366   :  { %507 = vsyncpa [#allocation6], 1 }
 0x367   :  { %508 = vsyncpa [#allocation9], 1 }
 0x368   :  { %509 = vsyncpa [#allocation4], 1 }

</bundles_post_ra>
